<compile_context>
chip_gen: v7x
topology: tpu7x:2x2x1
jax: 0.10.0
libtpu: 0.0.40
codegen_flags: <defaults>
</compile_context>

<pallas_src>
import functools

import jax
import jax.numpy as jnp
from jax import lax
from jax.experimental import pallas as pl
from jax.experimental.pallas import tpu as pltpu


# ----------------------------- Pallas kernel ------------------------------- #
def lstm_kernel(q_ref, p_ref, whh_ref, c_out_ref, *,
                seq_len, batch, batch_pad, hidden):
    """Single-layer LSTM recurrence over precomputed per-token gate rows.

    q_ref   : (B, S)      int32 token ids                                      (SMEM)
    p_ref   : (V, 1, 4H)  P[v] = ReLU(emb[v]) @ W_ih^T + bias, cols [i,f,o,g]  (VMEM)
    whh_ref : (H, 4H)     hidden->gates weights, cols [i, f, o, g]             (VMEM)
    c_out   : (B, H)      final cell state
    """
    S, B, Bp, H = seq_len, batch, batch_pad, hidden

    whh = whh_ref[...]                                        # (H, 4H), loaded once

    # ---- prologue (off the serial chain): gather per-step input-gate rows ------
    # dropout(p=0) and ReLU are already folded into P.
    gates_in = []
    for t in range(S):
        rows = []
        for b in range(Bp):
            if b < B:
                rows.append(p_ref[q_ref[b, t]])               # (1, 4H) dynamic row load
            else:
                rows.append(rows[0])   # padded rows: independent, dropped at the store
        gates_in.append(jnp.concatenate(rows, axis=0))        # (Bp, 4H) = one f32 vreg

    # ---- recurrence: only h @ W_hh + precomputed gates on the serial chain -----
    # TODO(synk): for larger H/B, keep W_hh MXU-stationary across steps via
    # pltpu.matmul_push_rhs / matmul_acc_lhs / matmul_pop; at (8,32)x(32,128) the
    # jnp.dot lowering is adequate.
    h = jnp.zeros((Bp, H), jnp.float32)
    c = jnp.zeros((Bp, H), jnp.float32)
    lane = lax.broadcasted_iota(jnp.int32, (Bp, 4 * H), 1)
    sig_mask = lane < 3 * H                                   # [i, f, o] lanes

    # Fully unrolled: S is static; at S=8 the live gates_in (8 vregs) is cheap.
    # TODO(synk): past S ~ 56 switch gates_in to a VMEM scratch + lax.fori_loop(unroll=8)
    # to bound vreg live ranges.
    for t in range(S):
        gates = gates_in[t] + jnp.dot(h, whh,
                                      preferred_element_type=jnp.float32)  # (Bp, 4H)
        # Full-vreg EUP pushes + VPU blend (no sub-vreg activation input slices).
        act = jnp.where(sig_mask, jax.nn.sigmoid(gates), jnp.tanh(gates))
        i_g = act[:, 0 * H:1 * H]
        f_g = act[:, 1 * H:2 * H]
        o_g = act[:, 2 * H:3 * H]
        g_g = act[:, 3 * H:4 * H]
        c = f_g * c + i_g * g_g
        h = o_g * jnp.tanh(c)

    # Padded rows are dropped here; keeps the wrapper free of a slice op.
    c_out_ref[...] = c[:B, :].astype(c_out_ref.dtype)


# --------------------- one-time parameter preparation ----------------------- #
def prepare_params(params):
    """Hoists all per-call weight glue off the forward path. Call once, reuse."""
    emb = params["embedding"]                    # (V, E)
    w_ih = params["w_ih"]                        # (4H, E) rows [i, f, g, o]
    w_hh = params["w_hh"]                        # (4H, H)
    bias = params["b_ih"] + params["b_hh"]       # (4H,)
    H = w_hh.shape[1]
    V = emb.shape[0]

    # Reorder gate blocks [i,f,g,o] -> [i,f,o,g]: sigmoid covers one contiguous 3H slab.
    def reorder(w):
        return jnp.concatenate([w[:2 * H], w[3 * H:4 * H], w[2 * H:3 * H]], axis=0)

    wih_r = reorder(w_ih)                        # (4H, E)
    whh_t = reorder(w_hh).T                      # (H, 4H)
    bias_r = reorder(bias)                       # (4H,)

    # Fold ReLU + input projection + bias into a per-token gate table.
    # Exact: ReLU commutes with the row gather; dropout(p=0) is identity.
    p = jnp.maximum(emb, 0.0) @ wih_r.T + bias_r[None, :]     # (V, 4H)
    p = p.reshape(V, 1, 4 * H)                   # leading-dim dynamically indexable

    return {"p_table": p, "whh_t": whh_t, "hidden": H}


# ------------------------------- wrapper ------------------------------------ #
def text_processor_forward(q, prepared):
    """q: (B, S) int32 token ids. Returns (B, H) final LSTM cell state."""
    p_table = prepared["p_table"]                # (V, 1, 4H)
    whh_t = prepared["whh_t"]                    # (H, 4H)
    H = prepared["hidden"]
    B, S = q.shape
    B_pad = max(8, ((B + 7) // 8) * 8)           # full f32 sublane group, padded in-kernel

    kernel = functools.partial(lstm_kernel, seq_len=S, batch=B,
                               batch_pad=B_pad, hidden=H)
    # VMEM resident: P (~400 KB after tile padding) + W_hh + output. Far below limits.
    # TODO(synk): on v7x (64 MiB VMEM) tile the time axis with a grid once the resident
    # gate rows approach ~16-32 MiB; irrelevant at these sizes. A batch-parallel grid
    # only pays off once B_pad >= ~128 (recurrence is serial in t).
    return pl.pallas_call(
        kernel,
        out_shape=jax.ShapeDtypeStruct((B, H), jnp.float32),
        in_specs=[
            pl.BlockSpec(memory_space=pltpu.MemorySpace.SMEM),   # token ids (B, S)
            pl.BlockSpec(memory_space=pltpu.MemorySpace.VMEM),   # P table  (V, 1, 4H)
            pl.BlockSpec(memory_space=pltpu.MemorySpace.VMEM),   # W_hh^T   (H, 4H)
        ],
        out_specs=pl.BlockSpec(memory_space=pltpu.MemorySpace.VMEM),
    )(q, p_table, whh_t)


# --------------------------- parameter init --------------------------------- #
def xavier_uniform(key, shape):
    fan_out, fan_in = shape[0], shape[1]
    limit = (6.0 / (fan_in + fan_out)) ** 0.5
    return jax.random.uniform(key, shape, jnp.float32, -limit, limit)


def init_params(key, embedding_tokens, embedding_features, lstm_features):
    E, H, V = embedding_features, lstm_features, embedding_tokens
    keys = jax.random.split(key, 9)
    # Embedding: xavier_uniform over the whole table (as in the PyTorch module).
    emb = xavier_uniform(keys[0], (V, E))
    # LSTM weights: xavier_uniform applied per-gate chunk (4 chunks of rows).
    w_ih = jnp.concatenate([xavier_uniform(keys[1 + g], (H, E)) for g in range(4)], axis=0)
    w_hh = jnp.concatenate([xavier_uniform(keys[5 + g], (H, H)) for g in range(4)], axis=0)
    b_ih = jnp.zeros((4 * H,), jnp.float32)
    b_hh = jnp.zeros((4 * H,), jnp.float32)
    return {"embedding": emb, "w_ih": w_ih, "w_hh": w_hh, "b_ih": b_ih, "b_hh": b_hh}


# ------------------------- pure-JAX reference -------------------------------- #
def reference_forward(q, params):
    emb = params["embedding"][q]                       # (B, S, E)
    x = jnp.maximum(emb, 0.0)
    H = params["w_hh"].shape[1]
    B, S, _ = x.shape
    wih_t = params["w_ih"].T
    whh_t = params["w_hh"].T
    b = params["b_ih"] + params["b_hh"]

    def step(carry, xt):
        h, c = carry
        gates = xt @ wih_t + h @ whh_t + b
        i = jax.nn.sigmoid(gates[:, 0 * H:1 * H])
        f = jax.nn.sigmoid(gates[:, 1 * H:2 * H])
        g = jnp.tanh(gates[:, 2 * H:3 * H])
        o = jax.nn.sigmoid(gates[:, 3 * H:4 * H])
        c = f * c + i * g
        h = o * jnp.tanh(c)
        return (h, c), None

    (h, c), _ = lax.scan(step, (jnp.zeros((B, H)), jnp.zeros((B, H))),
                         jnp.transpose(x, (1, 0, 2)))
    return c


# --------------------------------- main -------------------------------------- #
if __name__ == "__main__":
    embedding_tokens = 100
    embedding_features = 32
    lstm_features = 32
    batch, seq = 2, 8

    key = jax.random.PRNGKey(0)
    k_params, k_tokens = jax.random.split(key)
    params = init_params(k_params, embedding_tokens, embedding_features, lstm_features)
    prepared = prepare_params(params)   # one-time: reorder + transpose + fold ReLU/GEMM

    q = jax.random.randint(k_tokens, (batch, seq), 1, embedding_tokens, dtype=jnp.int32)

    c = text_processor_forward(q, prepared)
    c = jax.block_until_ready(c)

    c_ref = jax.block_until_ready(reference_forward(q, params))
    assert c.shape == (batch, lstm_features)
    assert jnp.max(jnp.abs(c - c_ref)) < 1e-5, "Pallas LSTM mismatch vs JAX reference"

    print("KERNEL_OK")
</pallas_src>

<mosaic_0001>
module attributes {stable_mosaic.version = 11 : i64} {
  func.func @lstm_kernel(%arg0: memref<2x8xi32, #tpu.memory_space<smem>>, %arg1: memref<100x1x128xf32, #tpu.memory_space<vmem>>, %arg2: memref<32x128xf32, #tpu.memory_space<vmem>>, %arg3: memref<2x32xf32, #tpu.memory_space<vmem>>) attributes {dimension_semantics = [], scalar_prefetch = 0 : i64, scratch_operands = 0 : i64, tpu.core_type = #tpu.core_type<tc>} {
    %c0 = arith.constant 0 : index
    %c0_0 = arith.constant 0 : index
    %0 = vector.load %arg2[%c0, %c0_0] : memref<32x128xf32, #tpu.memory_space<vmem>>, vector<32x128xf32>
    %c0_1 = arith.constant 0 : index
    %c0_2 = arith.constant 0 : index
    %1 = memref.load %arg0[%c0_1, %c0_2] : memref<2x8xi32, #tpu.memory_space<smem>>
    %2 = arith.index_cast %1 : i32 to index
    %c0_3 = arith.constant 0 : index
    %c0_4 = arith.constant 0 : index
    %3 = vector.load %arg1[%2, %c0_3, %c0_4] : memref<100x1x128xf32, #tpu.memory_space<vmem>>, vector<1x1x128xf32>
    %4 = vector.shape_cast %3 : vector<1x1x128xf32> to vector<1x128xf32>
    %c1 = arith.constant 1 : index
    %c0_5 = arith.constant 0 : index
    %5 = memref.load %arg0[%c1, %c0_5] : memref<2x8xi32, #tpu.memory_space<smem>>
    %6 = arith.index_cast %5 : i32 to index
    %c0_6 = arith.constant 0 : index
    %c0_7 = arith.constant 0 : index
    %7 = vector.load %arg1[%6, %c0_6, %c0_7] : memref<100x1x128xf32, #tpu.memory_space<vmem>>, vector<1x1x128xf32>
    %8 = vector.shape_cast %7 : vector<1x1x128xf32> to vector<1x128xf32>
    %9 = tpu.concatenate %4, %8, %4, %4, %4, %4, %4, %4 in 0 : vector<1x128xf32>, vector<1x128xf32>, vector<1x128xf32>, vector<1x128xf32>, vector<1x128xf32>, vector<1x128xf32>, vector<1x128xf32>, vector<1x128xf32> -> vector<8x128xf32>
    %c0_8 = arith.constant 0 : index
    %c1_9 = arith.constant 1 : index
    %10 = memref.load %arg0[%c0_8, %c1_9] : memref<2x8xi32, #tpu.memory_space<smem>>
    %11 = arith.index_cast %10 : i32 to index
    %c0_10 = arith.constant 0 : index
    %c0_11 = arith.constant 0 : index
    %12 = vector.load %arg1[%11, %c0_10, %c0_11] : memref<100x1x128xf32, #tpu.memory_space<vmem>>, vector<1x1x128xf32>
    %13 = vector.shape_cast %12 : vector<1x1x128xf32> to vector<1x128xf32>
    %c1_12 = arith.constant 1 : index
    %c1_13 = arith.constant 1 : index
    %14 = memref.load %arg0[%c1_12, %c1_13] : memref<2x8xi32, #tpu.memory_space<smem>>
    %15 = arith.index_cast %14 : i32 to index
    %c0_14 = arith.constant 0 : index
    %c0_15 = arith.constant 0 : index
    %16 = vector.load %arg1[%15, %c0_14, %c0_15] : memref<100x1x128xf32, #tpu.memory_space<vmem>>, vector<1x1x128xf32>
    %17 = vector.shape_cast %16 : vector<1x1x128xf32> to vector<1x128xf32>
    %18 = tpu.concatenate %13, %17, %13, %13, %13, %13, %13, %13 in 0 : vector<1x128xf32>, vector<1x128xf32>, vector<1x128xf32>, vector<1x128xf32>, vector<1x128xf32>, vector<1x128xf32>, vector<1x128xf32>, vector<1x128xf32> -> vector<8x128xf32>
    %c0_16 = arith.constant 0 : index
    %c2 = arith.constant 2 : index
    %19 = memref.load %arg0[%c0_16, %c2] : memref<2x8xi32, #tpu.memory_space<smem>>
    %20 = arith.index_cast %19 : i32 to index
    %c0_17 = arith.constant 0 : index
    %c0_18 = arith.constant 0 : index
    %21 = vector.load %arg1[%20, %c0_17, %c0_18] : memref<100x1x128xf32, #tpu.memory_space<vmem>>, vector<1x1x128xf32>
    %22 = vector.shape_cast %21 : vector<1x1x128xf32> to vector<1x128xf32>
    %c1_19 = arith.constant 1 : index
    %c2_20 = arith.constant 2 : index
    %23 = memref.load %arg0[%c1_19, %c2_20] : memref<2x8xi32, #tpu.memory_space<smem>>
    %24 = arith.index_cast %23 : i32 to index
    %c0_21 = arith.constant 0 : index
    %c0_22 = arith.constant 0 : index
    %25 = vector.load %arg1[%24, %c0_21, %c0_22] : memref<100x1x128xf32, #tpu.memory_space<vmem>>, vector<1x1x128xf32>
    %26 = vector.shape_cast %25 : vector<1x1x128xf32> to vector<1x128xf32>
    %27 = tpu.concatenate %22, %26, %22, %22, %22, %22, %22, %22 in 0 : vector<1x128xf32>, vector<1x128xf32>, vector<1x128xf32>, vector<1x128xf32>, vector<1x128xf32>, vector<1x128xf32>, vector<1x128xf32>, vector<1x128xf32> -> vector<8x128xf32>
    %c0_23 = arith.constant 0 : index
    %c3 = arith.constant 3 : index
    %28 = memref.load %arg0[%c0_23, %c3] : memref<2x8xi32, #tpu.memory_space<smem>>
    %29 = arith.index_cast %28 : i32 to index
    %c0_24 = arith.constant 0 : index
    %c0_25 = arith.constant 0 : index
    %30 = vector.load %arg1[%29, %c0_24, %c0_25] : memref<100x1x128xf32, #tpu.memory_space<vmem>>, vector<1x1x128xf32>
    %31 = vector.shape_cast %30 : vector<1x1x128xf32> to vector<1x128xf32>
    %c1_26 = arith.constant 1 : index
    %c3_27 = arith.constant 3 : index
    %32 = memref.load %arg0[%c1_26, %c3_27] : memref<2x8xi32, #tpu.memory_space<smem>>
    %33 = arith.index_cast %32 : i32 to index
    %c0_28 = arith.constant 0 : index
    %c0_29 = arith.constant 0 : index
    %34 = vector.load %arg1[%33, %c0_28, %c0_29] : memref<100x1x128xf32, #tpu.memory_space<vmem>>, vector<1x1x128xf32>
    %35 = vector.shape_cast %34 : vector<1x1x128xf32> to vector<1x128xf32>
    %36 = tpu.concatenate %31, %35, %31, %31, %31, %31, %31, %31 in 0 : vector<1x128xf32>, vector<1x128xf32>, vector<1x128xf32>, vector<1x128xf32>, vector<1x128xf32>, vector<1x128xf32>, vector<1x128xf32>, vector<1x128xf32> -> vector<8x128xf32>
    %c0_30 = arith.constant 0 : index
    %c4 = arith.constant 4 : index
    %37 = memref.load %arg0[%c0_30, %c4] : memref<2x8xi32, #tpu.memory_space<smem>>
    %38 = arith.index_cast %37 : i32 to index
    %c0_31 = arith.constant 0 : index
    %c0_32 = arith.constant 0 : index
    %39 = vector.load %arg1[%38, %c0_31, %c0_32] : memref<100x1x128xf32, #tpu.memory_space<vmem>>, vector<1x1x128xf32>
    %40 = vector.shape_cast %39 : vector<1x1x128xf32> to vector<1x128xf32>
    %c1_33 = arith.constant 1 : index
    %c4_34 = arith.constant 4 : index
    %41 = memref.load %arg0[%c1_33, %c4_34] : memref<2x8xi32, #tpu.memory_space<smem>>
    %42 = arith.index_cast %41 : i32 to index
    %c0_35 = arith.constant 0 : index
    %c0_36 = arith.constant 0 : index
    %43 = vector.load %arg1[%42, %c0_35, %c0_36] : memref<100x1x128xf32, #tpu.memory_space<vmem>>, vector<1x1x128xf32>
    %44 = vector.shape_cast %43 : vector<1x1x128xf32> to vector<1x128xf32>
    %45 = tpu.concatenate %40, %44, %40, %40, %40, %40, %40, %40 in 0 : vector<1x128xf32>, vector<1x128xf32>, vector<1x128xf32>, vector<1x128xf32>, vector<1x128xf32>, vector<1x128xf32>, vector<1x128xf32>, vector<1x128xf32> -> vector<8x128xf32>
    %c0_37 = arith.constant 0 : index
    %c5 = arith.constant 5 : index
    %46 = memref.load %arg0[%c0_37, %c5] : memref<2x8xi32, #tpu.memory_space<smem>>
    %47 = arith.index_cast %46 : i32 to index
    %c0_38 = arith.constant 0 : index
    %c0_39 = arith.constant 0 : index
    %48 = vector.load %arg1[%47, %c0_38, %c0_39] : memref<100x1x128xf32, #tpu.memory_space<vmem>>, vector<1x1x128xf32>
    %49 = vector.shape_cast %48 : vector<1x1x128xf32> to vector<1x128xf32>
    %c1_40 = arith.constant 1 : index
    %c5_41 = arith.constant 5 : index
    %50 = memref.load %arg0[%c1_40, %c5_41] : memref<2x8xi32, #tpu.memory_space<smem>>
    %51 = arith.index_cast %50 : i32 to index
    %c0_42 = arith.constant 0 : index
    %c0_43 = arith.constant 0 : index
    %52 = vector.load %arg1[%51, %c0_42, %c0_43] : memref<100x1x128xf32, #tpu.memory_space<vmem>>, vector<1x1x128xf32>
    %53 = vector.shape_cast %52 : vector<1x1x128xf32> to vector<1x128xf32>
    %54 = tpu.concatenate %49, %53, %49, %49, %49, %49, %49, %49 in 0 : vector<1x128xf32>, vector<1x128xf32>, vector<1x128xf32>, vector<1x128xf32>, vector<1x128xf32>, vector<1x128xf32>, vector<1x128xf32>, vector<1x128xf32> -> vector<8x128xf32>
    %c0_44 = arith.constant 0 : index
    %c6 = arith.constant 6 : index
    %55 = memref.load %arg0[%c0_44, %c6] : memref<2x8xi32, #tpu.memory_space<smem>>
    %56 = arith.index_cast %55 : i32 to index
    %c0_45 = arith.constant 0 : index
    %c0_46 = arith.constant 0 : index
    %57 = vector.load %arg1[%56, %c0_45, %c0_46] : memref<100x1x128xf32, #tpu.memory_space<vmem>>, vector<1x1x128xf32>
    %58 = vector.shape_cast %57 : vector<1x1x128xf32> to vector<1x128xf32>
    %c1_47 = arith.constant 1 : index
    %c6_48 = arith.constant 6 : index
    %59 = memref.load %arg0[%c1_47, %c6_48] : memref<2x8xi32, #tpu.memory_space<smem>>
    %60 = arith.index_cast %59 : i32 to index
    %c0_49 = arith.constant 0 : index
    %c0_50 = arith.constant 0 : index
    %61 = vector.load %arg1[%60, %c0_49, %c0_50] : memref<100x1x128xf32, #tpu.memory_space<vmem>>, vector<1x1x128xf32>
    %62 = vector.shape_cast %61 : vector<1x1x128xf32> to vector<1x128xf32>
    %63 = tpu.concatenate %58, %62, %58, %58, %58, %58, %58, %58 in 0 : vector<1x128xf32>, vector<1x128xf32>, vector<1x128xf32>, vector<1x128xf32>, vector<1x128xf32>, vector<1x128xf32>, vector<1x128xf32>, vector<1x128xf32> -> vector<8x128xf32>
    %c0_51 = arith.constant 0 : index
    %c7 = arith.constant 7 : index
    %64 = memref.load %arg0[%c0_51, %c7] : memref<2x8xi32, #tpu.memory_space<smem>>
    %65 = arith.index_cast %64 : i32 to index
    %c0_52 = arith.constant 0 : index
    %c0_53 = arith.constant 0 : index
    %66 = vector.load %arg1[%65, %c0_52, %c0_53] : memref<100x1x128xf32, #tpu.memory_space<vmem>>, vector<1x1x128xf32>
    %67 = vector.shape_cast %66 : vector<1x1x128xf32> to vector<1x128xf32>
    %c1_54 = arith.constant 1 : index
    %c7_55 = arith.constant 7 : index
    %68 = memref.load %arg0[%c1_54, %c7_55] : memref<2x8xi32, #tpu.memory_space<smem>>
    %69 = arith.index_cast %68 : i32 to index
    %c0_56 = arith.constant 0 : index
    %c0_57 = arith.constant 0 : index
    %70 = vector.load %arg1[%69, %c0_56, %c0_57] : memref<100x1x128xf32, #tpu.memory_space<vmem>>, vector<1x1x128xf32>
    %71 = vector.shape_cast %70 : vector<1x1x128xf32> to vector<1x128xf32>
    %72 = tpu.concatenate %67, %71, %67, %67, %67, %67, %67, %67 in 0 : vector<1x128xf32>, vector<1x128xf32>, vector<1x128xf32>, vector<1x128xf32>, vector<1x128xf32>, vector<1x128xf32>, vector<1x128xf32>, vector<1x128xf32> -> vector<8x128xf32>
    %cst = arith.constant 0.000000e+00 : f32
    %73 = vector.broadcast %cst : f32 to vector<8x32xf32>
    %cst_58 = arith.constant 0.000000e+00 : f32
    %74 = vector.broadcast %cst_58 : f32 to vector<8x32xf32>
    %75 = tpu.iota {dimensions = array<i32: 1>} : vector<8x128xi32>
    %c96_i32 = arith.constant 96 : i32
    %76 = vector.broadcast %c96_i32 : i32 to vector<8x128xi32>
    %77 = arith.cmpi slt, %75, %76 : vector<8x128xi32>
    %cst_59 = arith.constant dense<0.000000e+00> : vector<8x128xf32>
    %78 = tpu.matmul %73, %0, %cst_59 {dimension_numbers = #tpu.dot_dimension_numbers<[1], [0], [0], [1], [0, 0, 1, 1], [], []>} : vector<8x32xf32>, vector<32x128xf32>, vector<8x128xf32> -> vector<8x128xf32>
    %79 = arith.addf %9, %78 : vector<8x128xf32>
    %80 = arith.negf %79 : vector<8x128xf32>
    %81 = math.exp %80 : vector<8x128xf32>
    %cst_60 = arith.constant 1.000000e+00 : f32
    %82 = vector.broadcast %cst_60 : f32 to vector<8x128xf32>
    %83 = arith.addf %82, %81 : vector<8x128xf32>
    %84 = arith.divf %82, %83 : vector<8x128xf32>
    %85 = math.tanh %79 : vector<8x128xf32>
    %86 = arith.select %77, %84, %85 : vector<8x128xi1>, vector<8x128xf32>
    %87 = vector.extract_strided_slice %86 {offsets = [0, 0], sizes = [8, 32], strides = [1, 1]} : vector<8x128xf32> to vector<8x32xf32>
    %88 = vector.extract_strided_slice %86 {offsets = [0, 32], sizes = [8, 32], strides = [1, 1]} : vector<8x128xf32> to vector<8x32xf32>
    %89 = vector.extract_strided_slice %86 {offsets = [0, 64], sizes = [8, 32], strides = [1, 1]} : vector<8x128xf32> to vector<8x32xf32>
    %90 = vector.extract_strided_slice %86 {offsets = [0, 96], sizes = [8, 32], strides = [1, 1]} : vector<8x128xf32> to vector<8x32xf32>
    %91 = arith.mulf %88, %74 : vector<8x32xf32>
    %92 = arith.mulf %87, %90 : vector<8x32xf32>
    %93 = arith.addf %91, %92 : vector<8x32xf32>
    %94 = math.tanh %93 : vector<8x32xf32>
    %95 = arith.mulf %89, %94 : vector<8x32xf32>
    %cst_61 = arith.constant dense<0.000000e+00> : vector<8x128xf32>
    %96 = tpu.matmul %95, %0, %cst_61 {dimension_numbers = #tpu.dot_dimension_numbers<[1], [0], [0], [1], [0, 0, 1, 1], [], []>} : vector<8x32xf32>, vector<32x128xf32>, vector<8x128xf32> -> vector<8x128xf32>
    %97 = arith.addf %18, %96 : vector<8x128xf32>
    %98 = arith.negf %97 : vector<8x128xf32>
    %99 = math.exp %98 : vector<8x128xf32>
    %cst_62 = arith.constant 1.000000e+00 : f32
    %100 = vector.broadcast %cst_62 : f32 to vector<8x128xf32>
    %101 = arith.addf %100, %99 : vector<8x128xf32>
    %102 = arith.divf %100, %101 : vector<8x128xf32>
    %103 = math.tanh %97 : vector<8x128xf32>
    %104 = arith.select %77, %102, %103 : vector<8x128xi1>, vector<8x128xf32>
    %105 = vector.extract_strided_slice %104 {offsets = [0, 0], sizes = [8, 32], strides = [1, 1]} : vector<8x128xf32> to vector<8x32xf32>
    %106 = vector.extract_strided_slice %104 {offsets = [0, 32], sizes = [8, 32], strides = [1, 1]} : vector<8x128xf32> to vector<8x32xf32>
    %107 = vector.extract_strided_slice %104 {offsets = [0, 64], sizes = [8, 32], strides = [1, 1]} : vector<8x128xf32> to vector<8x32xf32>
    %108 = vector.extract_strided_slice %104 {offsets = [0, 96], sizes = [8, 32], strides = [1, 1]} : vector<8x128xf32> to vector<8x32xf32>
    %109 = arith.mulf %106, %93 : vector<8x32xf32>
    %110 = arith.mulf %105, %108 : vector<8x32xf32>
    %111 = arith.addf %109, %110 : vector<8x32xf32>
    %112 = math.tanh %111 : vector<8x32xf32>
    %113 = arith.mulf %107, %112 : vector<8x32xf32>
    %cst_63 = arith.constant dense<0.000000e+00> : vector<8x128xf32>
    %114 = tpu.matmul %113, %0, %cst_63 {dimension_numbers = #tpu.dot_dimension_numbers<[1], [0], [0], [1], [0, 0, 1, 1], [], []>} : vector<8x32xf32>, vector<32x128xf32>, vector<8x128xf32> -> vector<8x128xf32>
    %115 = arith.addf %27, %114 : vector<8x128xf32>
    %116 = arith.negf %115 : vector<8x128xf32>
    %117 = math.exp %116 : vector<8x128xf32>
    %cst_64 = arith.constant 1.000000e+00 : f32
    %118 = vector.broadcast %cst_64 : f32 to vector<8x128xf32>
    %119 = arith.addf %118, %117 : vector<8x128xf32>
    %120 = arith.divf %118, %119 : vector<8x128xf32>
    %121 = math.tanh %115 : vector<8x128xf32>
    %122 = arith.select %77, %120, %121 : vector<8x128xi1>, vector<8x128xf32>
    %123 = vector.extract_strided_slice %122 {offsets = [0, 0], sizes = [8, 32], strides = [1, 1]} : vector<8x128xf32> to vector<8x32xf32>
    %124 = vector.extract_strided_slice %122 {offsets = [0, 32], sizes = [8, 32], strides = [1, 1]} : vector<8x128xf32> to vector<8x32xf32>
    %125 = vector.extract_strided_slice %122 {offsets = [0, 64], sizes = [8, 32], strides = [1, 1]} : vector<8x128xf32> to vector<8x32xf32>
    %126 = vector.extract_strided_slice %122 {offsets = [0, 96], sizes = [8, 32], strides = [1, 1]} : vector<8x128xf32> to vector<8x32xf32>
    %127 = arith.mulf %124, %111 : vector<8x32xf32>
    %128 = arith.mulf %123, %126 : vector<8x32xf32>
    %129 = arith.addf %127, %128 : vector<8x32xf32>
    %130 = math.tanh %129 : vector<8x32xf32>
    %131 = arith.mulf %125, %130 : vector<8x32xf32>
    %cst_65 = arith.constant dense<0.000000e+00> : vector<8x128xf32>
    %132 = tpu.matmul %131, %0, %cst_65 {dimension_numbers = #tpu.dot_dimension_numbers<[1], [0], [0], [1], [0, 0, 1, 1], [], []>} : vector<8x32xf32>, vector<32x128xf32>, vector<8x128xf32> -> vector<8x128xf32>
    %133 = arith.addf %36, %132 : vector<8x128xf32>
    %134 = arith.negf %133 : vector<8x128xf32>
    %135 = math.exp %134 : vector<8x128xf32>
    %cst_66 = arith.constant 1.000000e+00 : f32
    %136 = vector.broadcast %cst_66 : f32 to vector<8x128xf32>
    %137 = arith.addf %136, %135 : vector<8x128xf32>
    %138 = arith.divf %136, %137 : vector<8x128xf32>
    %139 = math.tanh %133 : vector<8x128xf32>
    %140 = arith.select %77, %138, %139 : vector<8x128xi1>, vector<8x128xf32>
    %141 = vector.extract_strided_slice %140 {offsets = [0, 0], sizes = [8, 32], strides = [1, 1]} : vector<8x128xf32> to vector<8x32xf32>
    %142 = vector.extract_strided_slice %140 {offsets = [0, 32], sizes = [8, 32], strides = [1, 1]} : vector<8x128xf32> to vector<8x32xf32>
    %143 = vector.extract_strided_slice %140 {offsets = [0, 64], sizes = [8, 32], strides = [1, 1]} : vector<8x128xf32> to vector<8x32xf32>
    %144 = vector.extract_strided_slice %140 {offsets = [0, 96], sizes = [8, 32], strides = [1, 1]} : vector<8x128xf32> to vector<8x32xf32>
    %145 = arith.mulf %142, %129 : vector<8x32xf32>
    %146 = arith.mulf %141, %144 : vector<8x32xf32>
    %147 = arith.addf %145, %146 : vector<8x32xf32>
    %148 = math.tanh %147 : vector<8x32xf32>
    %149 = arith.mulf %143, %148 : vector<8x32xf32>
    %cst_67 = arith.constant dense<0.000000e+00> : vector<8x128xf32>
    %150 = tpu.matmul %149, %0, %cst_67 {dimension_numbers = #tpu.dot_dimension_numbers<[1], [0], [0], [1], [0, 0, 1, 1], [], []>} : vector<8x32xf32>, vector<32x128xf32>, vector<8x128xf32> -> vector<8x128xf32>
    %151 = arith.addf %45, %150 : vector<8x128xf32>
    %152 = arith.negf %151 : vector<8x128xf32>
    %153 = math.exp %152 : vector<8x128xf32>
    %cst_68 = arith.constant 1.000000e+00 : f32
    %154 = vector.broadcast %cst_68 : f32 to vector<8x128xf32>
    %155 = arith.addf %154, %153 : vector<8x128xf32>
    %156 = arith.divf %154, %155 : vector<8x128xf32>
    %157 = math.tanh %151 : vector<8x128xf32>
    %158 = arith.select %77, %156, %157 : vector<8x128xi1>, vector<8x128xf32>
    %159 = vector.extract_strided_slice %158 {offsets = [0, 0], sizes = [8, 32], strides = [1, 1]} : vector<8x128xf32> to vector<8x32xf32>
    %160 = vector.extract_strided_slice %158 {offsets = [0, 32], sizes = [8, 32], strides = [1, 1]} : vector<8x128xf32> to vector<8x32xf32>
    %161 = vector.extract_strided_slice %158 {offsets = [0, 64], sizes = [8, 32], strides = [1, 1]} : vector<8x128xf32> to vector<8x32xf32>
    %162 = vector.extract_strided_slice %158 {offsets = [0, 96], sizes = [8, 32], strides = [1, 1]} : vector<8x128xf32> to vector<8x32xf32>
    %163 = arith.mulf %160, %147 : vector<8x32xf32>
    %164 = arith.mulf %159, %162 : vector<8x32xf32>
    %165 = arith.addf %163, %164 : vector<8x32xf32>
    %166 = math.tanh %165 : vector<8x32xf32>
    %167 = arith.mulf %161, %166 : vector<8x32xf32>
    %cst_69 = arith.constant dense<0.000000e+00> : vector<8x128xf32>
    %168 = tpu.matmul %167, %0, %cst_69 {dimension_numbers = #tpu.dot_dimension_numbers<[1], [0], [0], [1], [0, 0, 1, 1], [], []>} : vector<8x32xf32>, vector<32x128xf32>, vector<8x128xf32> -> vector<8x128xf32>
    %169 = arith.addf %54, %168 : vector<8x128xf32>
    %170 = arith.negf %169 : vector<8x128xf32>
    %171 = math.exp %170 : vector<8x128xf32>
    %cst_70 = arith.constant 1.000000e+00 : f32
    %172 = vector.broadcast %cst_70 : f32 to vector<8x128xf32>
    %173 = arith.addf %172, %171 : vector<8x128xf32>
    %174 = arith.divf %172, %173 : vector<8x128xf32>
    %175 = math.tanh %169 : vector<8x128xf32>
    %176 = arith.select %77, %174, %175 : vector<8x128xi1>, vector<8x128xf32>
    %177 = vector.extract_strided_slice %176 {offsets = [0, 0], sizes = [8, 32], strides = [1, 1]} : vector<8x128xf32> to vector<8x32xf32>
    %178 = vector.extract_strided_slice %176 {offsets = [0, 32], sizes = [8, 32], strides = [1, 1]} : vector<8x128xf32> to vector<8x32xf32>
    %179 = vector.extract_strided_slice %176 {offsets = [0, 64], sizes = [8, 32], strides = [1, 1]} : vector<8x128xf32> to vector<8x32xf32>
    %180 = vector.extract_strided_slice %176 {offsets = [0, 96], sizes = [8, 32], strides = [1, 1]} : vector<8x128xf32> to vector<8x32xf32>
    %181 = arith.mulf %178, %165 : vector<8x32xf32>
    %182 = arith.mulf %177, %180 : vector<8x32xf32>
    %183 = arith.addf %181, %182 : vector<8x32xf32>
    %184 = math.tanh %183 : vector<8x32xf32>
    %185 = arith.mulf %179, %184 : vector<8x32xf32>
    %cst_71 = arith.constant dense<0.000000e+00> : vector<8x128xf32>
    %186 = tpu.matmul %185, %0, %cst_71 {dimension_numbers = #tpu.dot_dimension_numbers<[1], [0], [0], [1], [0, 0, 1, 1], [], []>} : vector<8x32xf32>, vector<32x128xf32>, vector<8x128xf32> -> vector<8x128xf32>
    %187 = arith.addf %63, %186 : vector<8x128xf32>
    %188 = arith.negf %187 : vector<8x128xf32>
    %189 = math.exp %188 : vector<8x128xf32>
    %cst_72 = arith.constant 1.000000e+00 : f32
    %190 = vector.broadcast %cst_72 : f32 to vector<8x128xf32>
    %191 = arith.addf %190, %189 : vector<8x128xf32>
    %192 = arith.divf %190, %191 : vector<8x128xf32>
    %193 = math.tanh %187 : vector<8x128xf32>
    %194 = arith.select %77, %192, %193 : vector<8x128xi1>, vector<8x128xf32>
    %195 = vector.extract_strided_slice %194 {offsets = [0, 0], sizes = [8, 32], strides = [1, 1]} : vector<8x128xf32> to vector<8x32xf32>
    %196 = vector.extract_strided_slice %194 {offsets = [0, 32], sizes = [8, 32], strides = [1, 1]} : vector<8x128xf32> to vector<8x32xf32>
    %197 = vector.extract_strided_slice %194 {offsets = [0, 64], sizes = [8, 32], strides = [1, 1]} : vector<8x128xf32> to vector<8x32xf32>
    %198 = vector.extract_strided_slice %194 {offsets = [0, 96], sizes = [8, 32], strides = [1, 1]} : vector<8x128xf32> to vector<8x32xf32>
    %199 = arith.mulf %196, %183 : vector<8x32xf32>
    %200 = arith.mulf %195, %198 : vector<8x32xf32>
    %201 = arith.addf %199, %200 : vector<8x32xf32>
    %202 = math.tanh %201 : vector<8x32xf32>
    %203 = arith.mulf %197, %202 : vector<8x32xf32>
    %cst_73 = arith.constant dense<0.000000e+00> : vector<8x128xf32>
    %204 = tpu.matmul %203, %0, %cst_73 {dimension_numbers = #tpu.dot_dimension_numbers<[1], [0], [0], [1], [0, 0, 1, 1], [], []>} : vector<8x32xf32>, vector<32x128xf32>, vector<8x128xf32> -> vector<8x128xf32>
    %205 = arith.addf %72, %204 : vector<8x128xf32>
    %206 = arith.negf %205 : vector<8x128xf32>
    %207 = math.exp %206 : vector<8x128xf32>
    %cst_74 = arith.constant 1.000000e+00 : f32
    %208 = vector.broadcast %cst_74 : f32 to vector<8x128xf32>
    %209 = arith.addf %208, %207 : vector<8x128xf32>
    %210 = arith.divf %208, %209 : vector<8x128xf32>
    %211 = math.tanh %205 : vector<8x128xf32>
    %212 = arith.select %77, %210, %211 : vector<8x128xi1>, vector<8x128xf32>
    %213 = vector.extract_strided_slice %212 {offsets = [0, 0], sizes = [8, 32], strides = [1, 1]} : vector<8x128xf32> to vector<8x32xf32>
    %214 = vector.extract_strided_slice %212 {offsets = [0, 32], sizes = [8, 32], strides = [1, 1]} : vector<8x128xf32> to vector<8x32xf32>
    %215 = vector.extract_strided_slice %212 {offsets = [0, 96], sizes = [8, 32], strides = [1, 1]} : vector<8x128xf32> to vector<8x32xf32>
    %216 = arith.mulf %214, %201 : vector<8x32xf32>
    %217 = arith.mulf %213, %215 : vector<8x32xf32>
    %218 = arith.addf %216, %217 : vector<8x32xf32>
    %219 = vector.extract_strided_slice %218 {offsets = [0, 0], sizes = [2, 32], strides = [1, 1]} : vector<8x32xf32> to vector<2x32xf32>
    %c0_75 = arith.constant 0 : index
    %c0_76 = arith.constant 0 : index
    %220 = vector.load %arg3[%c0_75, %c0_76] : memref<2x32xf32, #tpu.memory_space<vmem>>, vector<2x32xf32>
    tpu.vector_store %arg3[%c0_75, %c0_76], %219 {strides = array<i32>} : memref<2x32xf32, #tpu.memory_space<vmem>>, vector<2x32xf32>,
    return
  }
}

</mosaic_0001>

<bundles_post_ra>
// kernel: tpu_custom_call.1
= control target key start
LH: loop header
LB: loop body
LE: loop exit
PB: predicated region body
PF: predicated region fallthrough
CT: control target
= control target key end

     0   :  { %8 = vsyncpa [#allocation5], 0  ;;  %s1739_s0 = inlined_call_operand.hbm [shape: s32[2,8], index: 0, kind: input, shape index: {}]   ;;  %s1740_s1 = inlined_call_operand.hbm [shape: f32[100,1,128], index: 1, kind: input, shape index: {}]   ;;  %s1741_s2 = inlined_call_operand.hbm [shape: f32[32,128], index: 2, kind: input, shape index: {}]   ;;  %s1742_s3 = inlined_call_operand.hbm [shape: f32[2,32], index: 3, kind: output, shape index: {}]  }
   0x1   :  { %9 = vsyncpa [#allocation3], 0 }
   0x2   :  { %10 = vsyncpa [#allocation8], 0 }
   0x3   :  { %11 = vsyncpa [#allocation4], 0  ;;  %s1398_s14 = scalar_lea.hbm %s1739_s0, 32 }
   0x4   :  { %p1399_p0 = scmp.ne.s32.totalorder %s1739_s0, %s1398_s14  ;;  %p1402_p1 = scmp.lt.u32.totalorder %s1398_s14, %s1739_s0 }
   0x6   :  { %p1404_p2 = pnand %p1402_p1, %p1399_p0 }
   0x8   :  { %1407 = shalt.err (!%p1404_p2)
}
   0x9   :  { %s1482_s19 = smov [#allocation2]   ;;  %s1483_s22 = smov [#allocation6]  }
   0xa   :  { %19 = dma.hbm_to_smem %s1739_s0, 32, %s1482_s19, [#allocation5]  }
   0xb   :  { %s25_s23 = sshll.u32 %s1483_s22, 4  ;;  %s1408_s26 = scalar_lea.hbm %s1740_s1, 1600  ;;  %s26_s23 = int_to_ptr.vmem [resolvable:$true] %s25_s23 }
   0xc   :  { %p1409_p3 = scmp.ne.s32.totalorder %s1740_s1, %s1408_s26  ;;  %p1412_p4 = scmp.lt.u32.totalorder %s1408_s26, %s1740_s1 }
   0xe   :  { %p1414_p5 = pnand %p1412_p4, %p1409_p3 }
  0x10   :  { %1417 = shalt.err (!%p1414_p5)
}
  0x11   :  { %s1418_s4 = scalar_lea.vmem %s26_s23, 1600  ;;  %p1423_p7 = scmp.lt.s32.totalorder %s26_s23, %s26_s23 }
  0x12   :  { %p1419_p6 = scmp.ne.s32.totalorder %s26_s23, %s1418_s4  ;;  %p1424_p8 = scmp.lt.s32.totalorder %s1418_s4, %s1418_s4 }
  0x14   :  { %p1425_p9 = por %p1424_p8, %p1423_p7 }
  0x16   :  { %p1426_p10 = pnand %p1425_p9, %p1419_p6 }
  0x18   :  { %1429 = shalt.err (!%p1426_p10)
}
  0x19   :  { %s1484_s0 = smov 16   ;;  %s1485_s5 = smov 1  }
  0x1a   :  { %31 = dma.hbm_to_vmem [thread:$0]  %s1740_s1, 1600, %s26_s23, [#allocation3], %s1484_s0, %s1484_s0, %s1485_s5  }
  0x1b   :  { %s1486_s8 = smov [#allocation7]   ;;  %s1430_s12 = scalar_lea.hbm %s1741_s2, 512 }
  0x1c   :  { %s37_s9 = sshll.u32 %s1486_s8, 4  ;;  %p1431_p11 = scmp.ne.s32.totalorder %s1741_s2, %s1430_s12  ;;  %s38_s9 = int_to_ptr.vmem [resolvable:$true] %s37_s9 }
  0x1d   :  { %p1434_p12 = scmp.lt.u32.totalorder %s1430_s12, %s1741_s2 }
  0x1f   :  { %p1436_p13 = pnand %p1434_p12, %p1431_p11 }
  0x21   :  { %1439 = shalt.err (!%p1436_p13)
}
  0x22   :  { %s1440_s17 = scalar_lea.vmem %s38_s9, 512  ;;  %p1445_p1 = scmp.lt.s32.totalorder %s38_s9, %s38_s9 }
  0x23   :  { %p1441_p0 = scmp.ne.s32.totalorder %s38_s9, %s1440_s17  ;;  %p1446_p2 = scmp.lt.s32.totalorder %s1440_s17, %s1440_s17 }
  0x25   :  { %p1447_p3 = por %p1446_p2, %p1445_p1 }
  0x27   :  { %p1448_p4 = pnand %p1447_p3, %p1441_p0 }
  0x29   :  { %1451 = shalt.err (!%p1448_p4)
}
  0x2a   :  { %s1487_s1 = smov 128   ;;  %s1488_s18 = smov 8  }
  0x2b   :  { %43 = dma.hbm_to_vmem [thread:$0]  %s1741_s2, 512, %s38_s9, [#allocation8], %s1487_s1, %s1487_s1, %s1488_s18  }
  0x2c   :  { %1474 = dma.done.wait [#allocation5], 32  }
  0x2d   :  { %1475 = vsyncadd [#allocation5], 4294967264 }
  0x2e   :  { %1476 = dma.done.wait [#allocation3], 1600  }
  0x2f   :  { %1477 = vsyncadd [#allocation3], 4294965696 }
  0x30   :  { %1478 = dma.done.wait [#allocation8], 512  }
  0x31   :  { %1479 = vsyncadd [#allocation8], 4294966784 }
  0x32   :  { %53 = sfence }
  0x33   :  { %v54_v0 = vld [vmem:[#allocation7] sm:$0xff]  ;;  %v55_v1 = vld [vmem:[#allocation7 + $0x8] sm:$0xff]  ;;  %v56_v2 = vld [vmem:[#allocation7 + $0x10] sm:$0xff]  ;;  %v1489_v3 = vmov 0.0|0.0   ;;  %vm1490_vm0 = vmmov 0   ;;  %v1491_v6 = vmov 0.0   ;;  %v71_v8 = vlaneseq }
  0x34   :  { %1274 = vmatprep.subr.bf16.mxu0 %v1489_v3  ;;  %v1553_v4 = vpack.c.bf16 %v55_v1, %v54_v0  ;;  %v57_v5 = vld [vmem:[#allocation7 + $0x18] sm:$0xff]  ;;  %1194 = vmatprep.mubr.msk.f32.mxu0 %vm1490_vm0, %v1491_v6  ;;  %s58_s2 = sld [smem:[#allocation2]]  ;;  %vm76_vm1 = vcmask 1040384   ;;  %vm78_vm2 = vcmask 1041408   ;;  %vm80_vm3 = vcmask 1042432   ;;  %s1492_s24 = smov 32  }
  0x35   :  { %1280 = vmatprep.subr.bf16.mxu1 %v1489_v3  ;;  %1205 = vmatprep.mubr.msk.f32.mxu1 %vm1490_vm0, %v1491_v6  ;;  %v1561_v7 = vpack.c.bf16 %v57_v5, %v56_v2  ;;  %s1108_s21 = sld [smem:[#allocation2 + $0x80]]  ;;  %v72_v9 = vshrl.u32 %v71_v8, 7  ;;  %vm82_vm4 = vcmask 1043456   ;;  %vm84_vm5 = vcmask 1044480   ;;  %s1493_s25 = smov 64  }
  0x36   :  { %1276 = vmatpush3.bf16.msra.mxu0 %v1553_v4  ;;  %1282 = vmatpush3.bf16.msra.mxu1 %v1553_v4  ;;  %vm86_vm6 = vcmask 1045504   ;;  %vm88_vm7 = vcmask 1046528   ;;  %v1587_v27 = vand.u32 127, %v71_v8  ;;  %vm268_vm9 = vcmask 261120   ;;  %s1110_s26 = sld [smem:[#allocation2 + $0x1]]  ;;  %s1113_s30 = sld [smem:[#allocation2 + $0x2]] }
  0x37   :  { %1277 = vmatprep.subr.bf16.mxu0 %v1489_v3  ;;  %1283 = vmatprep.subr.bf16.mxu1 %v1489_v3  ;;  %v1577_v10 = vsub.s32 0, %v72_v9  ;;  %s1111_s27 = sld [smem:[#allocation2 + $0x81]]  ;;  %s1114_s4 = sld [smem:[#allocation2 + $0x82]]  ;;  %vm1073_vm10 = vcmask 254976  }
  0x38   :  { %vm267_vm8 = vcmp.lt.s32.totalorder %v1587_v27, 96  ;;  %s1116_s6 = sld [smem:[#allocation2 + $0x3]]  ;;  %s1119_s10 = sld [smem:[#allocation2 + $0x4]] }
  0x39   :  { %s1117_s7 = sld [smem:[#allocation2 + $0x83]]  ;;  %s1120_s11 = sld [smem:[#allocation2 + $0x84]] }
  0x3a   :  { %1279 = vmatpush3.bf16.msra.mxu0 %v1561_v7  ;;  %1285 = vmatpush3.bf16.msra.mxu1 %v1561_v7  ;;  %s59_s22 = scalar_lea.vmem [#allocation6], %s58_s2  ;;  %s1122_s14 = sld [smem:[#allocation2 + $0x5]] }
  0x3b   :  { %1286 = vmatprep.subr.bf16.mxu0 %v1489_v3  ;;  %1292 = vmatprep.subr.bf16.mxu1 %v1489_v3  ;;  %v60_v11 = vld [vmem:[%s59_s22] sm:$0x1]  ;;  %s62_s23 = scalar_lea.vmem [#allocation6], %s1108_s21  ;;  %s1123_s15 = sld [smem:[#allocation2 + $0x85]] }
  0x3c   :  { %v1109_v12 = vld [vmem:[%s62_s23] ss:$0 sm:$0xff]  ;;  %v74_v13 = vrot.slane %v60_v11, %v1577_v10  ;;  %s91_s28 = scalar_lea.vmem [#allocation6], %s1110_s26  ;;  %s116_s0 = scalar_lea.vmem [#allocation6], %s1113_s30 }
  0x3d   :  { %1195 = vmatmul.mubr.f32.vlgmr.msra.gmra.mrb[0].mxu0 %v1491_v6  ;;  %v77_v14 = vsel %vm76_vm1, %v60_v11, %v1109_v12  ;;  %v92_v40 = vld [vmem:[%s91_s28] sm:$0x1]  ;;  %s94_s29 = scalar_lea.vmem [#allocation6], %s1111_s27  ;;  %s119_s5 = scalar_lea.vmem [#allocation6], %s1114_s4 }
  0x3e   :  { %1288 = vmatpush3.bf16.msra.mxu0 %v1553_v4  ;;  %1216 = vmatprep.mubr.msk.f32.mxu0 %vm1490_vm0, %v1491_v6  ;;  %v79_v15 = vsel %vm78_vm2, %v77_v14, %v74_v13  ;;  %v1112_v41 = vld [vmem:[%s94_s29] ss:$0 sm:$0xff]  ;;  %v106_v42 = vrot.slane %v92_v40, %v1577_v10  ;;  %s141_s8 = scalar_lea.vmem [#allocation6], %s1116_s6  ;;  %s166_s12 = scalar_lea.vmem [#allocation6], %s1119_s10 }
  0x3f   :  { %1289 = vmatprep.subr.bf16.mxu0 %v1489_v3  ;;  %v81_v16 = vsel %vm80_vm3, %v79_v15, %v74_v13  ;;  %v108_v43 = vsel %vm76_vm1, %v92_v40, %v1112_v41  ;;  %v117_v8 = vld [vmem:[%s116_s0] sm:$0x1]  ;;  %s144_s9 = scalar_lea.vmem [#allocation6], %s1117_s7  ;;  %s169_s13 = scalar_lea.vmem [#allocation6], %s1120_s11 }
  0x40   :  { %v83_v17 = vsel %vm82_vm4, %v81_v16, %v74_v13  ;;  %v109_v44 = vsel %vm78_vm2, %v108_v43, %v106_v42  ;;  %v1115_v9 = vld [vmem:[%s119_s5] ss:$0 sm:$0xff]  ;;  %v131_v11 = vrot.slane %v117_v8, %v1577_v10  ;;  %s191_s16 = scalar_lea.vmem [#allocation6], %s1122_s14  ;;  %s1125_s1 = sld [smem:[#allocation2 + $0x6]] }
  0x41   :  { %v85_v18 = vsel %vm84_vm5, %v83_v17, %v74_v13  ;;  %v110_v45 = vsel %vm80_vm3, %v109_v44, %v106_v42  ;;  %v133_v12 = vsel %vm76_vm1, %v117_v8, %v1115_v9  ;;  %s194_s17 = scalar_lea.vmem [#allocation6], %s1123_s15  ;;  %s1126_s18 = sld [smem:[#allocation2 + $0x86]] }
  0x42   :  { %1291 = vmatpush3.bf16.msra.mxu0 %v1561_v7  ;;  %v87_v19 = vsel %vm86_vm6, %v85_v18, %v74_v13  ;;  %v111_v46 = vsel %vm82_vm4, %v110_v45, %v106_v42  ;;  %s1128_s2 = sld [smem:[#allocation2 + $0x7]]  ;;  %s1495_s26 = smov [#allocation9]  }
  0x43   :  { %1298 = vmatprep.subr.bf16.mxu0 %v1489_v3  ;;  %v89_v20 = vsel %vm88_vm7, %v87_v19, %v74_v13  ;;  %v112_v47 = vsel %vm84_vm5, %v111_v46, %v106_v42  ;;  %v134_v13 = vsel %vm78_vm2, %v133_v12, %v131_v11  ;;  %s1129_s21 = sld [smem:[#allocation2 + $0x87]]  ;;  %s1081_s27 = sshll.u32 %s1495_s26, 4  ;;  %s1082_s27 = int_to_ptr.vmem [resolvable:$true] %s1081_s27 }
  0x44   :  { %v113_v48 = vsel %vm86_vm6, %v112_v47, %v106_v42  ;;  %v135_v14 = vsel %vm80_vm3, %v134_v13, %v131_v11  ;;  %s1452_s28 = scalar_lea.vmem %s1082_s27, 32  ;;  %p1457_p6 = scmp.lt.s32.totalorder %s1082_s27, %s1082_s27 }
  0x45   :  { %v114_v49 = vsel %vm88_vm7, %v113_v48, %v106_v42  ;;  %v136_v15 = vsel %vm82_vm4, %v135_v14, %v131_v11  ;;  %p1453_p5 = scmp.ne.s32.totalorder %s1082_s27, %s1452_s28  ;;  %p1458_p7 = scmp.lt.s32.totalorder %s1452_s28, %s1452_s28 }
  0x46   :  { %v137_v16 = vsel %vm84_vm5, %v136_v15, %v131_v11  ;;  %s216_s19 = scalar_lea.vmem [#allocation6], %s1125_s1 }
  0x47   :  { %v138_v17 = vsel %vm86_vm6, %v137_v16, %v131_v11  ;;  %s219_s20 = scalar_lea.vmem [#allocation6], %s1126_s18  ;;  %p1459_p8 = por %p1458_p7, %p1457_p6 }
  0x48   :  { %v139_v18 = vsel %vm88_vm7, %v138_v17, %v131_v11  ;;  %s241_s22 = scalar_lea.vmem [#allocation6], %s1128_s2 }
  0x49   :  { %s244_s23 = scalar_lea.vmem [#allocation6], %s1129_s21  ;;  %p1460_p9 = pnand %p1459_p8, %p1453_p5 }
 0x110   :  { %v338_v21 = vpop.f32.mrb[0].mxu0 }
 0x111   :  { %v342_v22 = vadd.f32 %v338_v21, %v89_v20  ;;  %v1196_v23 = vpop.f32.mrb[1].mxu0 }
 0x113   :  { %v1131_v24 = vmul.f32 -1.442695, %v342_v22 }
 0x115   :  { %1336 = vpow2.f32 %v1131_v24 }
 0x116   :  { %1338 = vtanh.f32 %v342_v22 }
 0x11f   :  { %v1337_v25 = vpop.eup %1336 }
 0x120   :  { %v346_v26 = vadd.f32 1.0, %v1337_v25  ;;  %v1339_v28 = vpop.eup %1338 }
 0x122   :  { %1340 = vrcp.f32 %v346_v26 }
 0x12c   :  { %v1341_v29 = vpop.eup %1340 }
 0x12d   :  { %v350_v30 = vsel %vm267_vm8, %v1341_v29, %v1339_v28 }
 0x12e   :  { %353 = vrot.lane.b32.xlu0 %v350_v30, %s1492_s24  ;;  %v351_v33 = vmul.f32 0.0, %v350_v30 }
 0x1a0   :  { %v354_v31 = vpop.permute.xlu0 %353 }
 0x1a1   :  { %v356_v32 = vmul.f32 %v354_v31, %v350_v30 }
 0x1a3   :  { %358 = vrot.lane.b32.xlu0 %v356_v32, %s1492_s24 }
 0x215   :  { %v359_v34 = vpop.permute.xlu0 %358 }
 0x216   :  { %v361_v35 = vadd.f32 %v359_v34, %v351_v33 }
 0x218   :  { %1342 = vtanh.f32 %v361_v35 }
 0x222   :  { %v1343_v36 = vpop.eup %1342 }
 0x223   :  { %364 = vrot.lane.b32.xlu1 %v1343_v36, %s1492_s24 }
 0x295   :  { %v365_v37 = vpop.permute.xlu1 %364 }
 0x296   :  { %v367_v38 = vmul.f32 %v365_v37, %v350_v30 }
 0x298   :  { %369 = vrot.lane.b32.xlu1 %v367_v38, %s1493_s25  ;;  %v142_v38 = vld [vmem:[%s141_s8] sm:$0x1] }
 0x299   :  { %v156_v40 = vrot.slane %v142_v38, %v1577_v10 }
 0x30a   :  { %v370_v39 = vpop.permute.xlu1 %369 }
 0x30b   :  { %1206 = vmatmul.mubr.msk.f32.vlgmr.msra.gmra.mrb[0].mxu1 %vm268_vm9, %v370_v39  ;;  %v1118_v39 = vld [vmem:[%s144_s9] ss:$0 sm:$0xff] }
 0x30c   :  { %1294 = vmatpush3.bf16.msra.mxu1 %v1553_v4  ;;  %1227 = vmatprep.mubr.msk.f32.mxu1 %vm1490_vm0, %v1491_v6  ;;  %v158_v41 = vsel %vm76_vm1, %v142_v38, %v1118_v39 }
 0x30d   :  { %1295 = vmatprep.subr.bf16.mxu1 %v1489_v3  ;;  %v159_v42 = vsel %vm78_vm2, %v158_v41, %v156_v40 }
 0x30e   :  { %v160_v43 = vsel %vm80_vm3, %v159_v42, %v156_v40 }
 0x30f   :  { %v161_v44 = vsel %vm82_vm4, %v160_v43, %v156_v40 }
 0x310   :  { %1297 = vmatpush3.bf16.msra.mxu1 %v1561_v7  ;;  %v162_v45 = vsel %vm84_vm5, %v161_v44, %v156_v40 }
 0x311   :  { %1304 = vmatprep.subr.bf16.mxu1 %v1489_v3  ;;  %v163_v46 = vsel %vm86_vm6, %v162_v45, %v156_v40 }
 0x312   :  { %v164_v47 = vsel %vm88_vm7, %v163_v46, %v156_v40 }
 0x3de   :  { %v439_v50 = vpop.f32.mrb[0].mxu1 }
 0x3df   :  { %v443_v51 = vadd.f32 %v439_v50, %v114_v49  ;;  %v1207_v52 = vpop.f32.mrb[1].mxu1 }
 0x3e1   :  { %v1133_v53 = vmul.f32 -1.442695, %v443_v51 }
 0x3e3   :  { %1344 = vpow2.f32 %v1133_v53 }
 0x3e4   :  { %1346 = vtanh.f32 %v443_v51 }
 0x3ed   :  { %v1345_v54 = vpop.eup %1344 }
 0x3ee   :  { %v447_v55 = vadd.f32 1.0, %v1345_v54  ;;  %v1347_v56 = vpop.eup %1346 }
 0x3f0   :  { %1348 = vrcp.f32 %v447_v55 }
 0x3fa   :  { %v1349_v57 = vpop.eup %1348 }
 0x3fb   :  { %v451_v58 = vsel %vm267_vm8, %v1349_v57, %v1347_v56 }
 0x3fc   :  { %454 = vrot.lane.b32.xlu0 %v451_v58, %s1492_s24  ;;  %v452_v61 = vmul.f32 %v451_v58, %v361_v35 }
 0x46e   :  { %v455_v59 = vpop.permute.xlu0 %454 }
 0x46f   :  { %v457_v60 = vmul.f32 %v455_v59, %v451_v58 }
 0x471   :  { %459 = vrot.lane.b32.xlu1 %v457_v60, %s1492_s24 }
 0x4e3   :  { %v460_v62 = vpop.permute.xlu1 %459 }
 0x4e4   :  { %v462_v63 = vadd.f32 %v460_v62, %v452_v61 }
 0x4e6   :  { %1350 = vtanh.f32 %v462_v63 }
 0x4f0   :  { %v1351_v0 = vpop.eup %1350 }
 0x4f1   :  { %465 = vrot.lane.b32.xlu0 %v1351_v0, %s1492_s24 }
 0x563   :  { %v466_v1 = vpop.permute.xlu0 %465 }
 0x564   :  { %v468_v2 = vmul.f32 %v466_v1, %v451_v58 }
 0x566   :  { %470 = vrot.lane.b32.xlu1 %v468_v2, %s1493_s25  ;;  %v167_v2 = vld [vmem:[%s166_s12] sm:$0x1] }
 0x567   :  { %v181_v8 = vrot.slane %v167_v2, %v1577_v10 }
 0x5d8   :  { %v471_v5 = vpop.permute.xlu1 %470 }
 0x5d9   :  { %1217 = vmatmul.mubr.msk.f32.vlgmr.msra.gmra.mrb[2].mxu0 %vm268_vm9, %v471_v5  ;;  %v1121_v5 = vld [vmem:[%s169_s13] ss:$0 sm:$0xff] }
 0x5da   :  { %1300 = vmatpush3.bf16.msra.mxu0 %v1553_v4  ;;  %1238 = vmatprep.mubr.msk.f32.mxu0 %vm1490_vm0, %v1491_v6  ;;  %v183_v9 = vsel %vm76_vm1, %v167_v2, %v1121_v5 }
 0x5db   :  { %1301 = vmatprep.subr.bf16.mxu0 %v1489_v3  ;;  %v184_v11 = vsel %vm78_vm2, %v183_v9, %v181_v8 }
 0x5dc   :  { %v185_v12 = vsel %vm80_vm3, %v184_v11, %v181_v8 }
 0x5dd   :  { %v186_v13 = vsel %vm82_vm4, %v185_v12, %v181_v8 }
 0x5de   :  { %1303 = vmatpush3.bf16.msra.mxu0 %v1561_v7  ;;  %v187_v14 = vsel %vm84_vm5, %v186_v13, %v181_v8 }
 0x5df   :  { %1310 = vmatprep.subr.bf16.mxu0 %v1489_v3  ;;  %v188_v15 = vsel %vm86_vm6, %v187_v14, %v181_v8 }
 0x5e0   :  { %v189_v16 = vsel %vm88_vm7, %v188_v15, %v181_v8 }
 0x6ac   :  { %v540_v19 = vpop.f32.mrb[2].mxu0 }
 0x6ad   :  { %v544_v20 = vadd.f32 %v540_v19, %v139_v18  ;;  %v1218_v21 = vpop.f32.mrb[3].mxu0 }
 0x6af   :  { %v1135_v22 = vmul.f32 -1.442695, %v544_v20 }
 0x6b1   :  { %1352 = vpow2.f32 %v1135_v22 }
 0x6b2   :  { %1354 = vtanh.f32 %v544_v20 }
 0x6bb   :  { %v1353_v23 = vpop.eup %1352 }
 0x6bc   :  { %v548_v24 = vadd.f32 1.0, %v1353_v23  ;;  %v1355_v25 = vpop.eup %1354 }
 0x6be   :  { %1356 = vrcp.f32 %v548_v24 }
 0x6c8   :  { %v1357_v26 = vpop.eup %1356 }
 0x6c9   :  { %v552_v28 = vsel %vm267_vm8, %v1357_v26, %v1355_v25 }
 0x6ca   :  { %555 = vrot.lane.b32.xlu0 %v552_v28, %s1492_s24  ;;  %v553_v31 = vmul.f32 %v552_v28, %v462_v63 }
 0x73c   :  { %v556_v29 = vpop.permute.xlu0 %555 }
 0x73d   :  { %v558_v30 = vmul.f32 %v556_v29, %v552_v28 }
 0x73f   :  { %560 = vrot.lane.b32.xlu1 %v558_v30, %s1492_s24 }
 0x7b1   :  { %v561_v32 = vpop.permute.xlu1 %560 }
 0x7b2   :  { %v563_v33 = vadd.f32 %v561_v32, %v553_v31 }
 0x7b4   :  { %1358 = vtanh.f32 %v563_v33 }
 0x7be   :  { %v1359_v34 = vpop.eup %1358 }
 0x7bf   :  { %566 = vrot.lane.b32.xlu0 %v1359_v34, %s1492_s24 }
 0x831   :  { %v567_v35 = vpop.permute.xlu0 %566 }
 0x832   :  { %v569_v36 = vmul.f32 %v567_v35, %v552_v28 }
 0x834   :  { %571 = vrot.lane.b32.xlu1 %v569_v36, %s1493_s25  ;;  %v192_v36 = vld [vmem:[%s191_s16] sm:$0x1] }
 0x835   :  { %v206_v38 = vrot.slane %v192_v36, %v1577_v10 }
 0x8a6   :  { %v572_v37 = vpop.permute.xlu1 %571 }
 0x8a7   :  { %1228 = vmatmul.mubr.msk.f32.vlgmr.msra.gmra.mrb[2].mxu1 %vm268_vm9, %v572_v37  ;;  %v1124_v37 = vld [vmem:[%s194_s17] ss:$0 sm:$0xff] }
 0x8a8   :  { %1306 = vmatpush3.bf16.msra.mxu1 %v1553_v4  ;;  %1249 = vmatprep.mubr.msk.f32.mxu1 %vm1490_vm0, %v1491_v6  ;;  %v208_v39 = vsel %vm76_vm1, %v192_v36, %v1124_v37 }
 0x8a9   :  { %1307 = vmatprep.subr.bf16.mxu1 %v1489_v3  ;;  %v209_v40 = vsel %vm78_vm2, %v208_v39, %v206_v38 }
 0x8ac   :  { %1309 = vmatpush3.bf16.msra.mxu1 %v1561_v7 }
 0x8ad   :  { %1316 = vmatprep.subr.bf16.mxu1 %v1489_v3 }
 0x97a   :  { %v641_v48 = vpop.f32.mrb[2].mxu1 }
 0x97b   :  { %v645_v49 = vadd.f32 %v641_v48, %v164_v47  ;;  %v1229_v50 = vpop.f32.mrb[3].mxu1 }
 0x97d   :  { %v1137_v51 = vmul.f32 -1.442695, %v645_v49 }
 0x97f   :  { %1360 = vpow2.f32 %v1137_v51 }
 0x980   :  { %1362 = vtanh.f32 %v645_v49 }
 0x989   :  { %v1361_v52 = vpop.eup %1360 }
 0x98a   :  { %v649_v53 = vadd.f32 1.0, %v1361_v52  ;;  %v1363_v54 = vpop.eup %1362 }
 0x98c   :  { %1364 = vrcp.f32 %v649_v53 }
 0x996   :  { %v1365_v55 = vpop.eup %1364 }
 0x997   :  { %v653_v56 = vsel %vm267_vm8, %v1365_v55, %v1363_v54 }
 0x998   :  { %656 = vrot.lane.b32.xlu0 %v653_v56, %s1492_s24  ;;  %v654_v59 = vmul.f32 %v653_v56, %v563_v33 }
 0xa0a   :  { %v657_v57 = vpop.permute.xlu0 %656 }
 0xa0b   :  { %v659_v58 = vmul.f32 %v657_v57, %v653_v56 }
 0xa0d   :  { %661 = vrot.lane.b32.xlu1 %v659_v58, %s1492_s24 }
 0xa7f   :  { %v662_v60 = vpop.permute.xlu1 %661 }
 0xa80   :  { %v664_v61 = vadd.f32 %v662_v60, %v654_v59  ;;  %v217_v60 = vld [vmem:[%s216_s19] sm:$0x1] }
 0xa82   :  { %1366 = vtanh.f32 %v664_v61 }
 0xa8c   :  { %v1367_v62 = vpop.eup %1366 }
 0xa8d   :  { %667 = vrot.lane.b32.xlu0 %v1367_v62, %s1492_s24  ;;  %v231_v62 = vrot.slane %v217_v60, %v1577_v10 }
 0xaff   :  { %v668_v63 = vpop.permute.xlu0 %667 }
 0xb00   :  { %v670_v0 = vmul.f32 %v668_v63, %v653_v56 }
 0xb02   :  { %672 = vrot.lane.b32.xlu1 %v670_v0, %s1493_s25 }
 0xb74   :  { %v673_v1 = vpop.permute.xlu1 %672 }
 0xb75   :  { %1239 = vmatmul.mubr.msk.f32.vlgmr.msra.gmra.mrb[4].mxu0 %vm268_vm9, %v673_v1 }
 0xb76   :  { %1312 = vmatpush3.bf16.msra.mxu0 %v1553_v4  ;;  %1260 = vmatprep.mubr.msk.f32.mxu0 %vm1490_vm0, %v1491_v6 }
 0xb77   :  { %1313 = vmatprep.subr.bf16.mxu0 %v1489_v3 }
 0xb7a   :  { %1315 = vmatpush3.bf16.msra.mxu0 %v1561_v7 }
 0xc48   :  { %v742_v17 = vpop.f32.mrb[4].mxu0 }
 0xc49   :  { %v746_v18 = vadd.f32 %v742_v17, %v189_v16  ;;  %v1240_v19 = vpop.f32.mrb[5].mxu0 }
 0xc4b   :  { %v1139_v20 = vmul.f32 -1.442695, %v746_v18 }
 0xc4d   :  { %1368 = vpow2.f32 %v1139_v20 }
 0xc4e   :  { %1370 = vtanh.f32 %v746_v18 }
 0xc57   :  { %v1369_v21 = vpop.eup %1368 }
 0xc58   :  { %v750_v22 = vadd.f32 1.0, %v1369_v21  ;;  %v1371_v23 = vpop.eup %1370 }
 0xc5a   :  { %1372 = vrcp.f32 %v750_v22 }
 0xc64   :  { %v1373_v24 = vpop.eup %1372 }
 0xc65   :  { %v754_v25 = vsel %vm267_vm8, %v1373_v24, %v1371_v23 }
 0xc66   :  { %757 = vrot.lane.b32.xlu0 %v754_v25, %s1492_s24  ;;  %v755_v29 = vmul.f32 %v754_v25, %v664_v61  ;;  %v1127_v61 = vld [vmem:[%s219_s20] ss:$0 sm:$0xff] }
 0xc67   :  { %v233_v63 = vsel %vm76_vm1, %v217_v60, %v1127_v61 }
 0xc68   :  { %v234_v0 = vsel %vm78_vm2, %v233_v63, %v231_v62 }
 0xc69   :  { %v235_v1 = vsel %vm80_vm3, %v234_v0, %v231_v62 }
 0xc6a   :  { %v236_v2 = vsel %vm82_vm4, %v235_v1, %v231_v62 }
 0xc6b   :  { %v237_v5 = vsel %vm84_vm5, %v236_v2, %v231_v62 }
 0xc6c   :  { %v238_v8 = vsel %vm86_vm6, %v237_v5, %v231_v62 }
 0xc6d   :  { %v239_v9 = vsel %vm88_vm7, %v238_v8, %v231_v62 }
 0xcd8   :  { %v758_v26 = vpop.permute.xlu0 %757 }
 0xcd9   :  { %v760_v28 = vmul.f32 %v758_v26, %v754_v25 }
 0xcdb   :  { %762 = vrot.lane.b32.xlu1 %v760_v28, %s1492_s24 }
 0xd4d   :  { %v763_v30 = vpop.permute.xlu1 %762 }
 0xd4e   :  { %v765_v31 = vadd.f32 %v763_v30, %v755_v29  ;;  %v242_v30 = vld [vmem:[%s241_s22] sm:$0x1] }
 0xd50   :  { %1374 = vtanh.f32 %v765_v31 }
 0xd5a   :  { %v1375_v32 = vpop.eup %1374 }
 0xd5b   :  { %768 = vrot.lane.b32.xlu0 %v1375_v32, %s1492_s24  ;;  %v256_v32 = vrot.slane %v242_v30, %v1577_v10 }
 0xdcd   :  { %v769_v33 = vpop.permute.xlu0 %768 }
 0xdce   :  { %v771_v34 = vmul.f32 %v769_v33, %v754_v25 }
 0xdd0   :  { %773 = vrot.lane.b32.xlu1 %v771_v34, %s1493_s25 }
 0xe42   :  { %v774_v35 = vpop.permute.xlu1 %773 }
 0xe43   :  { %1250 = vmatmul.mubr.msk.f32.vlgmr.msra.gmra.mrb[4].mxu1 %vm268_vm9, %v774_v35 }
 0xe44   :  { %1318 = vmatpush3.bf16.msra.mxu1 %v1553_v4  ;;  %1271 = vmatprep.mubr.msk.f32.mxu1 %vm1490_vm0, %v1491_v6  ;;  %v210_v4 = vsel %vm80_vm3, %v209_v40, %v206_v38 }
 0xe45   :  { %1319 = vmatprep.subr.bf16.mxu1 %v1489_v3  ;;  %v211_v6 = vsel %vm82_vm4, %v210_v4, %v206_v38 }
 0xe46   :  { %v212_v3 = vsel %vm84_vm5, %v211_v6, %v206_v38 }
 0xe48   :  { %1321 = vmatpush3.bf16.msra.mxu1 %v1561_v7  ;;  %v213_v7 = vsel %vm86_vm6, %v212_v3, %v206_v38 }
 0xe49   :  { %v214_v41 = vsel %vm88_vm7, %v213_v7, %v206_v38 }
 0xf16   :  { %v843_v42 = vpop.f32.mrb[4].mxu1 }
 0xf17   :  { %v847_v43 = vadd.f32 %v843_v42, %v214_v41  ;;  %v1251_v44 = vpop.f32.mrb[5].mxu1 }
 0xf19   :  { %v1141_v45 = vmul.f32 -1.442695, %v847_v43 }
 0xf1b   :  { %1376 = vpow2.f32 %v1141_v45 }
 0xf1c   :  { %1378 = vtanh.f32 %v847_v43 }
 0xf25   :  { %v1377_v46 = vpop.eup %1376 }
 0xf26   :  { %v851_v47 = vadd.f32 1.0, %v1377_v46  ;;  %v1379_v48 = vpop.eup %1378 }
 0xf28   :  { %1380 = vrcp.f32 %v851_v47 }
 0xf32   :  { %v1381_v49 = vpop.eup %1380 }
 0xf33   :  { %v855_v50 = vsel %vm267_vm8, %v1381_v49, %v1379_v48 }
 0xf34   :  { %858 = vrot.lane.b32.xlu0 %v855_v50, %s1492_s24  ;;  %v856_v53 = vmul.f32 %v855_v50, %v765_v31  ;;  %v1130_v31 = vld [vmem:[%s244_s23] ss:$0 sm:$0xff] }
 0xf35   :  { %v258_v33 = vsel %vm76_vm1, %v242_v30, %v1130_v31 }
 0xf36   :  { %v259_v34 = vsel %vm78_vm2, %v258_v33, %v256_v32 }
 0xf37   :  { %v260_v35 = vsel %vm80_vm3, %v259_v34, %v256_v32 }
 0xf38   :  { %v261_v36 = vsel %vm82_vm4, %v260_v35, %v256_v32 }
 0xf39   :  { %v262_v37 = vsel %vm84_vm5, %v261_v36, %v256_v32 }
 0xf3a   :  { %v263_v38 = vsel %vm86_vm6, %v262_v37, %v256_v32 }
 0xf3b   :  { %v264_v39 = vsel %vm88_vm7, %v263_v38, %v256_v32 }
 0xfa6   :  { %v859_v51 = vpop.permute.xlu0 %858 }
 0xfa7   :  { %v861_v52 = vmul.f32 %v859_v51, %v855_v50 }
 0xfa9   :  { %863 = vrot.lane.b32.xlu1 %v861_v52, %s1492_s24 }
0x101b   :  { %v864_v54 = vpop.permute.xlu1 %863 }
0x101c   :  { %v866_v55 = vadd.f32 %v864_v54, %v856_v53 }
0x101e   :  { %1382 = vtanh.f32 %v866_v55 }
0x1028   :  { %v1383_v56 = vpop.eup %1382 }
0x1029   :  { %869 = vrot.lane.b32.xlu0 %v1383_v56, %s1492_s24 }
0x109b   :  { %v870_v57 = vpop.permute.xlu0 %869 }
0x109c   :  { %v872_v58 = vmul.f32 %v870_v57, %v855_v50 }
0x109e   :  { %874 = vrot.lane.b32.xlu1 %v872_v58, %s1493_s25 }
0x1110   :  { %v875_v59 = vpop.permute.xlu1 %874 }
0x1111   :  { %1261 = vmatmul.mubr.msk.f32.vlgmr.msra.gmra.mrb[6].mxu0 %vm268_vm9, %v875_v59 }
0x11e4   :  { %v944_v11 = vpop.f32.mrb[6].mxu0 }
0x11e5   :  { %v948_v12 = vadd.f32 %v944_v11, %v239_v9  ;;  %v1262_v13 = vpop.f32.mrb[7].mxu0 }
0x11e7   :  { %v1143_v14 = vmul.f32 -1.442695, %v948_v12 }
0x11e9   :  { %1384 = vpow2.f32 %v1143_v14 }
0x11ea   :  { %1386 = vtanh.f32 %v948_v12 }
0x11f3   :  { %v1385_v15 = vpop.eup %1384 }
0x11f4   :  { %v952_v16 = vadd.f32 1.0, %v1385_v15  ;;  %v1387_v17 = vpop.eup %1386 }
0x11f6   :  { %1388 = vrcp.f32 %v952_v16 }
0x1200   :  { %v1389_v18 = vpop.eup %1388 }
0x1201   :  { %v956_v19 = vsel %vm267_vm8, %v1389_v18, %v1387_v17 }
0x1202   :  { %959 = vrot.lane.b32.xlu0 %v956_v19, %s1492_s24  ;;  %v957_v22 = vmul.f32 %v956_v19, %v866_v55 }
0x1274   :  { %v960_v20 = vpop.permute.xlu0 %959 }
0x1275   :  { %v962_v21 = vmul.f32 %v960_v20, %v956_v19 }
0x1277   :  { %964 = vrot.lane.b32.xlu1 %v962_v21, %s1492_s24 }
0x12e9   :  { %v965_v23 = vpop.permute.xlu1 %964 }
0x12ea   :  { %v967_v24 = vadd.f32 %v965_v23, %v957_v22 }
0x12ec   :  { %1390 = vtanh.f32 %v967_v24 }
0x12f6   :  { %v1391_v25 = vpop.eup %1390 }
0x12f7   :  { %970 = vrot.lane.b32.xlu0 %v1391_v25, %s1492_s24 }
0x1369   :  { %v971_v26 = vpop.permute.xlu0 %970 }
0x136a   :  { %v973_v28 = vmul.f32 %v971_v26, %v956_v19 }
0x136c   :  { %975 = vrot.lane.b32.xlu1 %v973_v28, %s1493_s25  ;;  %s1494_s25 = smov 96  }
0x13de   :  { %v976_v29 = vpop.permute.xlu1 %975 }
0x13df   :  { %1272 = vmatmul.mubr.msk.f32.vlgmr.msra.gmra.mrb[6].mxu1 %vm268_vm9, %v976_v29 }
0x14b2   :  { %v1045_v40 = vpop.f32.mrb[6].mxu1 }
0x14b3   :  { %v1049_v4 = vadd.f32 %v1045_v40, %v264_v39  ;;  %v1273_v6 = vpop.f32.mrb[7].mxu1 }
0x14b5   :  { %v1145_v3 = vmul.f32 -1.442695, %v1049_v4 }
0x14b7   :  { %1392 = vpow2.f32 %v1145_v3 }
0x14b8   :  { %1394 = vtanh.f32 %v1049_v4 }
0x14c1   :  { %v1393_v10 = vpop.eup %1392 }
0x14c2   :  { %v1053_v7 = vadd.f32 1.0, %v1393_v10  ;;  %v1395_v41 = vpop.eup %1394 }
0x14c4   :  { %1396 = vrcp.f32 %v1053_v7 }
0x14ce   :  { %v1397_v42 = vpop.eup %1396 }
0x14cf   :  { %v1057_v43 = vsel %vm267_vm8, %v1397_v42, %v1395_v41 }
0x14d0   :  { %1060 = vrot.lane.b32.xlu0 %v1057_v43, %s1492_s24  ;;  %v1058_v46 = vmul.f32 %v1057_v43, %v967_v24 }
0x1542   :  { %v1061_v44 = vpop.permute.xlu0 %1060 }
0x1543   :  { %v1063_v45 = vmul.f32 %v1061_v44, %v1057_v43 }
0x1545   :  { %1065 = vrot.lane.b32.xlu1 %v1063_v45, %s1492_s24 }
0x15b7   :  { %v1066_v47 = vpop.permute.xlu1 %1065 }
0x15b8   :  { %v1068_v48 = vadd.f32 %v1066_v47, %v1058_v46 }
0x15ba   :  { %1070 = vrot.lane.b32.xlu0 %v1068_v48, %s1494_s25 }
0x162c   :  { %v1071_v49 = vpop.permute.xlu0 %1070 }
0x162d   :  { %1074 = vst.msk [vmem:[#allocation9] sm:$0x3] %vm1073_vm10, %v1071_v49 }
0x162e   :  { %1463 = shalt.err (!%p1460_p9)
}
0x162f   :  { %s1464_s30 = scalar_lea.hbm %s1742_s3, 32 }
0x1630   :  { %p1465_p10 = scmp.ne.s32.totalorder %s1742_s3, %s1464_s30  ;;  %p1468_p11 = scmp.lt.u32.totalorder %s1464_s30, %s1742_s3 }
0x1632   :  { %p1470_p12 = pnand %p1468_p11, %p1465_p10 }
0x1634   :  { %1473 = shalt.err (!%p1470_p12)
}
0x1635   :  { %1084 = dma.vmem_to_hbm [thread:$0]  %s1082_s27, 32, %s1742_s3, [#allocation4]  }
0x1636   :  { %1480 = dma.done.wait [#allocation4], 32  }
0x1637   :  { %1481 = vsyncadd [#allocation4], 4294967264 }
0x1638   :  { %1088 = vsyncpa [#allocation3], 1 }
0x1639   :  { %1089 = vsyncpa [#allocation8], 1 }
0x163a   :  { %1090 = vsyncpa [#allocation4], 1 }
0x163b   :  { %1091 = vsyncpa [#allocation5], 1 }

</bundles_post_ra>
